<compile_context>
chip_gen: v6e
topology: v6e:2x2x1
jax: 0.10.0
libtpu: 0.0.40
codegen_flags: <defaults>
</compile_context>

<pallas_src>
import functools

import jax
import jax.numpy as jnp
from jax.experimental import pallas as pl
from jax.experimental.pallas import tpu as pltpu


def _round_up(x, m):
    return ((x + m - 1) // m) * m


def _split_bf16_planes(x_f32, n_planes=3):
    """Split an f32 array into `n_planes` f32 arrays whose values are exactly
    representable in bf16 and whose sum reproduces x to ~2^-24 relative error.
    Because every plane is bf16-exact, an MXU matmul against it gives the same
    result no matter how many bf16 passes the compiler uses for f32 matmuls."""
    planes = []
    r = x_f32.astype(jnp.float32)
    for _ in range(n_planes):
        p = r.astype(jnp.bfloat16).astype(jnp.float32)
        planes.append(p)
        r = r - p
    return planes


def _danish_kernel(ids_ref, nonpad_ref, e0_ref, e1_ref, e2_ref,
                   w1t_ref, b1_ref, w2t_ref, b2_ref, out_ref,
                   *, seq_len, apply_softmax):
    tb = ids_ref.shape[0]
    v_pad = e0_ref.shape[0]

    # ---- token-count matrix: counts[b, v] = #occurrences of token v in row b ----
    # Padding tokens ARE counted (their embedding row is exactly what nn.Embedding
    # would have summed -- normally all zero).  Ids >= V only hit zero-padded rows.
    # counts <= seq_len, exact in bf16 for seq_len <= 256.
    ids = ids_ref[...]                                              # (TB, L) int32
    vocab_iota = jax.lax.broadcasted_iota(jnp.int32, (tb, v_pad), 1)
    counts = jnp.zeros((tb, v_pad), jnp.float32)
    for l in range(seq_len):                                        # static, lane-dense compares
        counts = counts + (ids[:, l:l + 1] == vocab_iota).astype(jnp.float32)

    # ---- gather + sum over the sequence, fused into MXU matmuls (exact: counts and
    #      the bf16-split table planes are all bf16-representable) ----
    emb_sum = jnp.dot(counts, e0_ref[...], preferred_element_type=jnp.float32)
    emb_sum = emb_sum + jnp.dot(counts, e1_ref[...], preferred_element_type=jnp.float32)
    emb_sum = emb_sum + jnp.dot(counts, e2_ref[...], preferred_element_type=jnp.float32)

    # ---- masked mean (exact f32 divide; all-padding rows give 0/0 = NaN like torch) ----
    composition = emb_sum / nonpad_ref[...]                         # (TB, E_pad)

    # ---- fc1 + ReLU (weights pre-transposed at prepare time: no in-kernel .T) ----
    h = jnp.dot(composition, w1t_ref[...], preferred_element_type=jnp.float32) + b1_ref[...]
    h = jnp.maximum(h, 0.0)

    # ---- fc2 ----
    out = jnp.dot(h, w2t_ref[...], preferred_element_type=jnp.float32) + b2_ref[...]

    if apply_softmax:
        # padded class columns carry a -1e30 bias -> exp() == 0, excluded from the sum
        m = jnp.max(out, axis=1, keepdims=True)
        e = jnp.exp(out - m)
        out = e / jnp.sum(e, axis=1, keepdims=True)

    out_ref[...] = out


def make_danish_forward(emb_table, w1, b1, w2, b2, *, padding_idx):
    """Builds padded/transposed parameters ONCE and returns
    forward(batch_x, softmax=False) -> (B, num_classes) float32 logits/probs."""
    emb_table = jnp.asarray(emb_table, jnp.float32)
    w1 = jnp.asarray(w1, jnp.float32)
    b1 = jnp.asarray(b1, jnp.float32)
    w2 = jnp.asarray(w2, jnp.float32)
    b2 = jnp.asarray(b2, jnp.float32)

    V, E = emb_table.shape
    H = w1.shape[0]
    C = w2.shape[0]

    V_pad = _round_up(V, 128)
    E_pad = _round_up(E, 128)
    H_pad = _round_up(H, 128)
    C_pad = _round_up(C, 128)

    # One-time padding / transposition / bf16-plane split (NOT per forward call).
    emb_p = jnp.zeros((V_pad, E_pad), jnp.float32).at[:V, :E].set(emb_table)
    e0, e1, e2 = _split_bf16_planes(emb_p)
    w1t = jnp.zeros((E_pad, H_pad), jnp.float32).at[:E, :H].set(w1.T)
    b1p = jnp.zeros((1, H_pad), jnp.float32).at[0, :H].set(b1)
    w2t = jnp.zeros((H_pad, C_pad), jnp.float32).at[:H, :C].set(w2.T)
    # padded class columns get a huge negative bias so the in-kernel softmax ignores them
    b2p = jnp.full((1, C_pad), -1e30, jnp.float32).at[0, :C].set(b2)

    table_bytes = 3 * V_pad * E_pad * 4
    weight_bytes = (E_pad * H_pad + H_pad + H_pad * C_pad + C_pad) * 4
    if table_bytes + weight_bytes > (24 << 20):
        # TODO(synk): large-vocab variant (HBM-resident table + cross-step
        # double-buffered DMA row gather) is not implemented.
        raise NotImplementedError("embedding table too large for the VMEM-resident kernel")

    def forward(batch_x, softmax=False):
        B, L = batch_x.shape
        ids = batch_x.astype(jnp.int32)

        # Batch tile: >= 8 sublanes, grows toward 256 (fills the 256-wide MXU on
        # v6e/v7x) but keeps >= 2 grid steps when the batch allows it so v7x can
        # shard the "parallel" batch axis across its two TensorCores.
        TB = 8
        while TB < 256 and TB * 2 <= _round_up(B, 8):
            TB *= 2
        while TB > 8 and _round_up(B, TB) // TB < 2:
            TB //= 2
        B_pad = _round_up(B, TB)

        ids_p = jnp.full((B_pad, L), padding_idx, jnp.int32).at[:B, :].set(ids)
        nonpad = jnp.sum(ids != padding_idx, axis=-1, keepdims=True).astype(jnp.float32)
        nonpad_p = jnp.ones((B_pad, 1), jnp.float32).at[:B, :].set(nonpad)

        kernel = functools.partial(_danish_kernel, seq_len=L,
                                   apply_softmax=bool(softmax))

        # Scoped VMEM limit derived from the actual buffers (v5e default is 16 MiB).
        block_bytes = (TB * L + TB + TB * C_pad) * 4
        need = 2 * (table_bytes + weight_bytes + block_bytes)   # worst case: all x2-buffered
        vmem_limit = int(min(64 << 20, max(need + (2 << 20), 16 << 20)))

        n_mxu = 3 * V_pad * E_pad + E_pad * H_pad + H_pad * C_pad
        cost = pl.CostEstimate(
            flops=int(2 * B_pad * n_mxu + B_pad * L * V_pad),
            transcendentals=int(B_pad * C_pad) if softmax else 0,
            bytes_accessed=int((B_pad * L + B_pad + B_pad * C_pad) * 4
                               + table_bytes + weight_bytes),
        )

        grid_spec = pltpu.PrefetchScalarGridSpec(
            num_scalar_prefetch=0,
            grid=(B_pad // TB,),
            in_specs=[
                pl.BlockSpec((TB, L), lambda i: (i, 0)),            # token ids
                pl.BlockSpec((TB, 1), lambda i: (i, 0)),            # nonpad counts
                pl.BlockSpec((V_pad, E_pad), lambda i: (0, 0)),     # table plane hi
                pl.BlockSpec((V_pad, E_pad), lambda i: (0, 0)),     # table plane mid
                pl.BlockSpec((V_pad, E_pad), lambda i: (0, 0)),     # table plane lo
                pl.BlockSpec((E_pad, H_pad), lambda i: (0, 0)),     # fc1 W^T
                pl.BlockSpec((1, H_pad), lambda i: (0, 0)),         # fc1 b
                pl.BlockSpec((H_pad, C_pad), lambda i: (0, 0)),     # fc2 W^T
                pl.BlockSpec((1, C_pad), lambda i: (0, 0)),         # fc2 b
            ],
            out_specs=pl.BlockSpec((TB, C_pad), lambda i: (i, 0)),
        )

        out_p = pl.pallas_call(
            kernel,
            out_shape=jax.ShapeDtypeStruct((B_pad, C_pad), jnp.float32),
            grid_spec=grid_spec,
            compiler_params=pltpu.CompilerParams(
                dimension_semantics=("parallel",),
                vmem_limit_bytes=vmem_limit,
            ),
            cost_estimate=cost,
        )(ids_p, nonpad_p, e0, e1, e2, w1t, b1p, w2t, b2p)

        return out_p[:B, :C]

    return forward


def danish_forward(batch_x, emb_table, w1, b1, w2, b2, *, padding_idx, softmax=False):
    """One-off convenience wrapper (builds padded params and runs once)."""
    fwd = make_danish_forward(emb_table, w1, b1, w2, b2, padding_idx=padding_idx)
    return fwd(batch_x, softmax=softmax)


def _reference(batch_x, emb_table, w1, b1, w2, b2, padding_idx, softmax=False):
    emb = emb_table[batch_x]                                             # (B, L, E)
    nonpad = jnp.sum(batch_x != padding_idx, axis=-1).reshape(-1, 1)     # (B, 1)
    comp = jnp.sum(emb, axis=1) / nonpad
    h = jax.nn.relu(comp @ w1.T + b1)
    out = h @ w2.T + b2
    if softmax:
        out = jax.nn.softmax(out, axis=1)
    return out


if __name__ == "__main__":
    VOCAB_SIZE = 64
    EMBEDDING_DIM = 32
    HIDDEN_DIM = 32
    NUM_CLASSES = 8
    PADDING_IDX = 0
    B, L = 2, 8

    key = jax.random.PRNGKey(0)
    k_emb, k_w1, k_w2, k_ids = jax.random.split(key, 4)

    # nn.Embedding default init ~ N(0,1); row `padding_idx` zeroed.
    emb_table = jax.random.normal(k_emb, (VOCAB_SIZE, EMBEDDING_DIM), jnp.float32)
    emb_table = emb_table.at[PADDING_IDX].set(0.0)

    # init_weights(): uniform(-0.5, 0.5) weights, zero biases.
    initrange = 0.5
    w1 = jax.random.uniform(k_w1, (HIDDEN_DIM, EMBEDDING_DIM), jnp.float32,
                            -initrange, initrange)
    b1 = jnp.zeros((HIDDEN_DIM,), jnp.float32)
    w2 = jax.random.uniform(k_w2, (NUM_CLASSES, HIDDEN_DIM), jnp.float32,
                            -initrange, initrange)
    b2 = jnp.zeros((NUM_CLASSES,), jnp.float32)

    # Token ids; force a couple of padding tokens.
    batch_x = jax.random.randint(k_ids, (B, L), 1, VOCAB_SIZE, dtype=jnp.int32)
    batch_x = batch_x.at[:, -2:].set(PADDING_IDX)

    # Build padded/transposed params once; jit the hot forward.
    forward = jax.jit(
        make_danish_forward(emb_table, w1, b1, w2, b2, padding_idx=PADDING_IDX),
        static_argnames=("softmax",))

    # logits path
    out = jax.block_until_ready(forward(batch_x, softmax=False))
    ref = _reference(batch_x, emb_table, w1, b1, w2, b2, PADDING_IDX, softmax=False)
    assert out.shape == (B, NUM_CLASSES)
    assert jnp.allclose(out, ref, atol=2e-5, rtol=2e-5), "logits mismatch vs reference"

    # softmax path (exact divide in-kernel)
    out_sm = jax.block_until_ready(forward(batch_x, softmax=True))
    ref_sm = _reference(batch_x, emb_table, w1, b1, w2, b2, PADDING_IDX, softmax=True)
    assert jnp.allclose(out_sm, ref_sm, atol=1e-4, rtol=1e-4), "softmax mismatch vs reference"

    print("KERNEL_OK")
</pallas_src>

<mosaic_0001>
module attributes {stable_mosaic.version = 11 : i64} {
  func.func @_danish_kernel(%arg0: i32, %arg1: memref<8x8xi32, #tpu.memory_space<vmem>>, %arg2: memref<8x1xf32, #tpu.memory_space<vmem>>, %arg3: memref<128x128xf32, #tpu.memory_space<vmem>>, %arg4: memref<128x128xf32, #tpu.memory_space<vmem>>, %arg5: memref<128x128xf32, #tpu.memory_space<vmem>>, %arg6: memref<128x128xf32, #tpu.memory_space<vmem>>, %arg7: memref<1x128xf32, #tpu.memory_space<vmem>>, %arg8: memref<128x128xf32, #tpu.memory_space<vmem>>, %arg9: memref<1x128xf32, #tpu.memory_space<vmem>>, %arg10: memref<8x128xf32, #tpu.memory_space<vmem>>) attributes {dimension_semantics = [#tpu.dimension_semantics<parallel>], iteration_bounds = array<i64: 1>, scalar_prefetch = 0 : i64, scratch_operands = 0 : i64, tpu.core_type = #tpu.core_type<tc>, window_params = [{transform_indices = @transform_0, window_bounds = array<i64: 8, 8>}, {transform_indices = @transform_1, window_bounds = array<i64: 8, 1>}, {pipeline_mode = #tpu.pipeline_mode<synchronous>, transform_indices = @transform_2, window_bounds = array<i64: 128, 128>}, {pipeline_mode = #tpu.pipeline_mode<synchronous>, transform_indices = @transform_3, window_bounds = array<i64: 128, 128>}, {pipeline_mode = #tpu.pipeline_mode<synchronous>, transform_indices = @transform_4, window_bounds = array<i64: 128, 128>}, {pipeline_mode = #tpu.pipeline_mode<synchronous>, transform_indices = @transform_5, window_bounds = array<i64: 128, 128>}, {pipeline_mode = #tpu.pipeline_mode<synchronous>, transform_indices = @transform_6, window_bounds = array<i64: 1, 128>}, {pipeline_mode = #tpu.pipeline_mode<synchronous>, transform_indices = @transform_7, window_bounds = array<i64: 128, 128>}, {pipeline_mode = #tpu.pipeline_mode<synchronous>, transform_indices = @transform_8, window_bounds = array<i64: 1, 128>}, {transform_indices = @transform_9, window_bounds = array<i64: 8, 128>}]} {
    %c0 = arith.constant 0 : index
    %c0_0 = arith.constant 0 : index
    %0 = vector.load %arg1[%c0, %c0_0] : memref<8x8xi32, #tpu.memory_space<vmem>>, vector<8x8xi32>
    %1 = tpu.iota {dimensions = array<i32: 1>} : vector<8x128xi32>
    %cst = arith.constant 0.000000e+00 : f32
    %2 = vector.broadcast %cst : f32 to vector<8x128xf32>
    %3 = vector.extract_strided_slice %0 {offsets = [0, 0], sizes = [8, 1], strides = [1, 1]} : vector<8x8xi32> to vector<8x1xi32>
    %4 = vector.broadcast %3 : vector<8x1xi32> to vector<8x128xi32>
    %5 = arith.cmpi eq, %4, %1 : vector<8x128xi32>
    %6 = arith.extui %5 : vector<8x128xi1> to vector<8x128xi32>
    %7 = arith.sitofp %6 : vector<8x128xi32> to vector<8x128xf32>
    %8 = arith.addf %2, %7 : vector<8x128xf32>
    %9 = vector.extract_strided_slice %0 {offsets = [0, 1], sizes = [8, 1], strides = [1, 1]} : vector<8x8xi32> to vector<8x1xi32>
    %10 = vector.broadcast %9 : vector<8x1xi32> to vector<8x128xi32>
    %11 = arith.cmpi eq, %10, %1 : vector<8x128xi32>
    %12 = arith.extui %11 : vector<8x128xi1> to vector<8x128xi32>
    %13 = arith.sitofp %12 : vector<8x128xi32> to vector<8x128xf32>
    %14 = arith.addf %8, %13 : vector<8x128xf32>
    %15 = vector.extract_strided_slice %0 {offsets = [0, 2], sizes = [8, 1], strides = [1, 1]} : vector<8x8xi32> to vector<8x1xi32>
    %16 = vector.broadcast %15 : vector<8x1xi32> to vector<8x128xi32>
    %17 = arith.cmpi eq, %16, %1 : vector<8x128xi32>
    %18 = arith.extui %17 : vector<8x128xi1> to vector<8x128xi32>
    %19 = arith.sitofp %18 : vector<8x128xi32> to vector<8x128xf32>
    %20 = arith.addf %14, %19 : vector<8x128xf32>
    %21 = vector.extract_strided_slice %0 {offsets = [0, 3], sizes = [8, 1], strides = [1, 1]} : vector<8x8xi32> to vector<8x1xi32>
    %22 = vector.broadcast %21 : vector<8x1xi32> to vector<8x128xi32>
    %23 = arith.cmpi eq, %22, %1 : vector<8x128xi32>
    %24 = arith.extui %23 : vector<8x128xi1> to vector<8x128xi32>
    %25 = arith.sitofp %24 : vector<8x128xi32> to vector<8x128xf32>
    %26 = arith.addf %20, %25 : vector<8x128xf32>
    %27 = vector.extract_strided_slice %0 {offsets = [0, 4], sizes = [8, 1], strides = [1, 1]} : vector<8x8xi32> to vector<8x1xi32>
    %28 = vector.broadcast %27 : vector<8x1xi32> to vector<8x128xi32>
    %29 = arith.cmpi eq, %28, %1 : vector<8x128xi32>
    %30 = arith.extui %29 : vector<8x128xi1> to vector<8x128xi32>
    %31 = arith.sitofp %30 : vector<8x128xi32> to vector<8x128xf32>
    %32 = arith.addf %26, %31 : vector<8x128xf32>
    %33 = vector.extract_strided_slice %0 {offsets = [0, 5], sizes = [8, 1], strides = [1, 1]} : vector<8x8xi32> to vector<8x1xi32>
    %34 = vector.broadcast %33 : vector<8x1xi32> to vector<8x128xi32>
    %35 = arith.cmpi eq, %34, %1 : vector<8x128xi32>
    %36 = arith.extui %35 : vector<8x128xi1> to vector<8x128xi32>
    %37 = arith.sitofp %36 : vector<8x128xi32> to vector<8x128xf32>
    %38 = arith.addf %32, %37 : vector<8x128xf32>
    %39 = vector.extract_strided_slice %0 {offsets = [0, 6], sizes = [8, 1], strides = [1, 1]} : vector<8x8xi32> to vector<8x1xi32>
    %40 = vector.broadcast %39 : vector<8x1xi32> to vector<8x128xi32>
    %41 = arith.cmpi eq, %40, %1 : vector<8x128xi32>
    %42 = arith.extui %41 : vector<8x128xi1> to vector<8x128xi32>
    %43 = arith.sitofp %42 : vector<8x128xi32> to vector<8x128xf32>
    %44 = arith.addf %38, %43 : vector<8x128xf32>
    %45 = vector.extract_strided_slice %0 {offsets = [0, 7], sizes = [8, 1], strides = [1, 1]} : vector<8x8xi32> to vector<8x1xi32>
    %46 = vector.broadcast %45 : vector<8x1xi32> to vector<8x128xi32>
    %47 = arith.cmpi eq, %46, %1 : vector<8x128xi32>
    %48 = arith.extui %47 : vector<8x128xi1> to vector<8x128xi32>
    %49 = arith.sitofp %48 : vector<8x128xi32> to vector<8x128xf32>
    %50 = arith.addf %44, %49 : vector<8x128xf32>
    %c0_1 = arith.constant 0 : index
    %c0_2 = arith.constant 0 : index
    %51 = vector.load %arg3[%c0_1, %c0_2] : memref<128x128xf32, #tpu.memory_space<vmem>>, vector<128x128xf32>
    %cst_3 = arith.constant dense<0.000000e+00> : vector<8x128xf32>
    %52 = tpu.matmul %50, %51, %cst_3 {dimension_numbers = #tpu.dot_dimension_numbers<[1], [0], [0], [1], [0, 0, 1, 1], [], []>} : vector<8x128xf32>, vector<128x128xf32>, vector<8x128xf32> -> vector<8x128xf32>
    %c0_4 = arith.constant 0 : index
    %c0_5 = arith.constant 0 : index
    %53 = vector.load %arg4[%c0_4, %c0_5] : memref<128x128xf32, #tpu.memory_space<vmem>>, vector<128x128xf32>
    %cst_6 = arith.constant dense<0.000000e+00> : vector<8x128xf32>
    %54 = tpu.matmul %50, %53, %cst_6 {dimension_numbers = #tpu.dot_dimension_numbers<[1], [0], [0], [1], [0, 0, 1, 1], [], []>} : vector<8x128xf32>, vector<128x128xf32>, vector<8x128xf32> -> vector<8x128xf32>
    %55 = arith.addf %52, %54 : vector<8x128xf32>
    %c0_7 = arith.constant 0 : index
    %c0_8 = arith.constant 0 : index
    %56 = vector.load %arg5[%c0_7, %c0_8] : memref<128x128xf32, #tpu.memory_space<vmem>>, vector<128x128xf32>
    %cst_9 = arith.constant dense<0.000000e+00> : vector<8x128xf32>
    %57 = tpu.matmul %50, %56, %cst_9 {dimension_numbers = #tpu.dot_dimension_numbers<[1], [0], [0], [1], [0, 0, 1, 1], [], []>} : vector<8x128xf32>, vector<128x128xf32>, vector<8x128xf32> -> vector<8x128xf32>
    %58 = arith.addf %55, %57 : vector<8x128xf32>
    %c0_10 = arith.constant 0 : index
    %c0_11 = arith.constant 0 : index
    %59 = vector.load %arg2[%c0_10, %c0_11] : memref<8x1xf32, #tpu.memory_space<vmem>>, vector<8x1xf32>
    %60 = vector.broadcast %59 : vector<8x1xf32> to vector<8x128xf32>
    %61 = arith.divf %58, %60 : vector<8x128xf32>
    %c0_12 = arith.constant 0 : index
    %c0_13 = arith.constant 0 : index
    %62 = vector.load %arg6[%c0_12, %c0_13] : memref<128x128xf32, #tpu.memory_space<vmem>>, vector<128x128xf32>
    %cst_14 = arith.constant dense<0.000000e+00> : vector<8x128xf32>
    %63 = tpu.matmul %61, %62, %cst_14 {dimension_numbers = #tpu.dot_dimension_numbers<[1], [0], [0], [1], [0, 0, 1, 1], [], []>} : vector<8x128xf32>, vector<128x128xf32>, vector<8x128xf32> -> vector<8x128xf32>
    %c0_15 = arith.constant 0 : index
    %c0_16 = arith.constant 0 : index
    %64 = vector.load %arg7[%c0_15, %c0_16] : memref<1x128xf32, #tpu.memory_space<vmem>>, vector<1x128xf32>
    %65 = vector.broadcast %64 : vector<1x128xf32> to vector<8x128xf32>
    %66 = arith.addf %63, %65 : vector<8x128xf32>
    %cst_17 = arith.constant 0.000000e+00 : f32
    %67 = vector.broadcast %cst_17 : f32 to vector<8x128xf32>
    %68 = arith.maximumf %66, %67 : vector<8x128xf32>
    %c0_18 = arith.constant 0 : index
    %c0_19 = arith.constant 0 : index
    %69 = vector.load %arg8[%c0_18, %c0_19] : memref<128x128xf32, #tpu.memory_space<vmem>>, vector<128x128xf32>
    %cst_20 = arith.constant dense<0.000000e+00> : vector<8x128xf32>
    %70 = tpu.matmul %68, %69, %cst_20 {dimension_numbers = #tpu.dot_dimension_numbers<[1], [0], [0], [1], [0, 0, 1, 1], [], []>} : vector<8x128xf32>, vector<128x128xf32>, vector<8x128xf32> -> vector<8x128xf32>
    %c0_21 = arith.constant 0 : index
    %c0_22 = arith.constant 0 : index
    %71 = vector.load %arg9[%c0_21, %c0_22] : memref<1x128xf32, #tpu.memory_space<vmem>>, vector<1x128xf32>
    %72 = vector.broadcast %71 : vector<1x128xf32> to vector<8x128xf32>
    %73 = arith.addf %70, %72 : vector<8x128xf32>
    %c0_23 = arith.constant 0 : index
    %c0_24 = arith.constant 0 : index
    %74 = vector.load %arg10[%c0_23, %c0_24] : memref<8x128xf32, #tpu.memory_space<vmem>>, vector<8x128xf32>
    tpu.vector_store %arg10[%c0_23, %c0_24], %73 {strides = array<i32>} : memref<8x128xf32, #tpu.memory_space<vmem>>, vector<8x128xf32>,
    return
  }
  func.func @transform_0(%arg0: i32) -> (i32, i32) {
    %c0_i32 = arith.constant 0 : i32
    %c0_i32_0 = arith.constant 0 : i32
    return %arg0, %c0_i32 : i32, i32
  }
  func.func @transform_1(%arg0: i32) -> (i32, i32) {
    %c0_i32 = arith.constant 0 : i32
    %c0_i32_0 = arith.constant 0 : i32
    return %arg0, %c0_i32 : i32, i32
  }
  func.func @transform_2(%arg0: i32) -> (i32, i32) {
    %c0_i32 = arith.constant 0 : i32
    %c0_i32_0 = arith.constant 0 : i32
    %c0_i32_1 = arith.constant 0 : i32
    return %c0_i32, %c0_i32_0 : i32, i32
  }
  func.func @transform_3(%arg0: i32) -> (i32, i32) {
    %c0_i32 = arith.constant 0 : i32
    %c0_i32_0 = arith.constant 0 : i32
    %c0_i32_1 = arith.constant 0 : i32
    return %c0_i32, %c0_i32_0 : i32, i32
  }
  func.func @transform_4(%arg0: i32) -> (i32, i32) {
    %c0_i32 = arith.constant 0 : i32
    %c0_i32_0 = arith.constant 0 : i32
    %c0_i32_1 = arith.constant 0 : i32
    return %c0_i32, %c0_i32_0 : i32, i32
  }
  func.func @transform_5(%arg0: i32) -> (i32, i32) {
    %c0_i32 = arith.constant 0 : i32
    %c0_i32_0 = arith.constant 0 : i32
    %c0_i32_1 = arith.constant 0 : i32
    return %c0_i32, %c0_i32_0 : i32, i32
  }
  func.func @transform_6(%arg0: i32) -> (i32, i32) {
    %c0_i32 = arith.constant 0 : i32
    %c0_i32_0 = arith.constant 0 : i32
    %c0_i32_1 = arith.constant 0 : i32
    return %c0_i32, %c0_i32_0 : i32, i32
  }
  func.func @transform_7(%arg0: i32) -> (i32, i32) {
    %c0_i32 = arith.constant 0 : i32
    %c0_i32_0 = arith.constant 0 : i32
    %c0_i32_1 = arith.constant 0 : i32
    return %c0_i32, %c0_i32_0 : i32, i32
  }
  func.func @transform_8(%arg0: i32) -> (i32, i32) {
    %c0_i32 = arith.constant 0 : i32
    %c0_i32_0 = arith.constant 0 : i32
    %c0_i32_1 = arith.constant 0 : i32
    return %c0_i32, %c0_i32_0 : i32, i32
  }
  func.func @transform_9(%arg0: i32) -> (i32, i32) {
    %c0_i32 = arith.constant 0 : i32
    %c0_i32_0 = arith.constant 0 : i32
    return %arg0, %c0_i32 : i32, i32
  }
}

</mosaic_0001>

<bundles_post_ra>
// kernel: forward.1
= control target key start
LH: loop header
LB: loop body
LE: loop exit
PB: predicated region body
PF: predicated region fallthrough
CT: control target
= control target key end

     0   :  { %14 = vsyncpa [#allocation3], 0  ;;  %s1247_s0 = inlined_call_operand.vmem [shape: s32[8,8], index: 0, kind: input, shape index: {}]   ;;  %s1248_s1 = inlined_call_operand.vmem [shape: f32[8,1], index: 1, kind: input, shape index: {}]   ;;  %s1249_s2 = inlined_call_operand.hbm [shape: f32[128,128], index: 2, kind: input, shape index: {}]   ;;  %s1250_s3 = inlined_call_operand.hbm [shape: f32[128,128], index: 3, kind: input, shape index: {}]   ;;  %s1251_s4 = inlined_call_operand.hbm [shape: f32[128,128], index: 4, kind: input, shape index: {}]   ;;  %s1252_s5 = inlined_call_operand.hbm [shape: f32[128,128], index: 5, kind: input, shape index: {}]   ;;  %s1253_s6 = inlined_call_operand.vmem [shape: f32[1,128], index: 6, kind: input, shape index: {}]   ;;  %s1254_s7 = inlined_call_operand.hbm [shape: f32[128,128], index: 7, kind: input, shape index: {}]   ;;  %s1255_s8 = inlined_call_operand.vmem [shape: f32[1,128], index: 8, kind: input, shape index: {}]   ;;  %s1256_s9 = inlined_call_operand.vmem [shape: f32[8,128], index: 9, kind: output, shape index: {}]  }
   0x1   :  { %15 = vsyncpa [#allocation5], 0 }
   0x2   :  { %16 = vsyncpa [#allocation8], 0  ;;  %s1025_s30 = smov [#allocation4]   ;;  %s1026_s11 = smov [#allocation7]  }
   0x3   :  { %s38_s10 = sshll.u32 %s1025_s30, 4  ;;  %s62_s12 = sshll.u32 %s1026_s11, 4  ;;  %s39_s10 = int_to_ptr.vmem [resolvable:$true] %s38_s10  ;;  %s63_s12 = int_to_ptr.vmem [resolvable:$true] %s62_s12 }
   0x4   :  { %s927_s13 = scalar_lea.vmem %s39_s10, 2048  ;;  %p932_p1 = scmp.lt.s32.totalorder %s39_s10, %s39_s10 }
   0x5   :  { %p928_p0 = scmp.ne.s32.totalorder %s39_s10, %s927_s13  ;;  %p933_p2 = scmp.lt.s32.totalorder %s927_s13, %s927_s13 }
   0x7   :  { %p934_p3 = por %p933_p2, %p932_p1 }
   0x9   :  { %p935_p4 = pnand %p934_p3, %p928_p0 }
   0xb   :  { %938 = shalt.err (!%p935_p4)
}
   0xc   :  { %s1027_s14 = smov 128   ;;  %s1028_s15 = smov 8  }
   0xd   :  { %44 = dma.hbm_to_vmem [thread:$0]  %s1250_s3, 2048, %s39_s10, [#allocation5], %s1027_s14, %s1027_s14, %s1028_s15  }
   0xe   :  { %s947_s18 = scalar_lea.vmem %s63_s12, 2048  ;;  %p952_p6 = scmp.lt.s32.totalorder %s63_s12, %s63_s12 }
   0xf   :  { %p948_p5 = scmp.ne.s32.totalorder %s63_s12, %s947_s18  ;;  %p953_p7 = scmp.lt.s32.totalorder %s947_s18, %s947_s18 }
  0x11   :  { %p954_p8 = por %p953_p7, %p952_p6 }
  0x13   :  { %p955_p9 = pnand %p954_p8, %p948_p5 }
  0x15   :  { %958 = shalt.err (!%p955_p9)
}
  0x16   :  { %68 = dma.hbm_to_vmem [thread:$0]  %s1252_s5, 2048, %s63_s12, [#allocation8], %s1027_s14, %s1027_s14, %s1028_s15  }
  0x17   :  { %s1029_s21 = smov [#allocation2]   ;;  %s1030_s23 = smov [#allocation6]  }
  0x18   :  { %s26_s22 = sshll.u32 %s1029_s21, 4  ;;  %s50_s24 = sshll.u32 %s1030_s23, 4  ;;  %s27_s22 = int_to_ptr.vmem [resolvable:$true] %s26_s22  ;;  %s51_s24 = int_to_ptr.vmem [resolvable:$true] %s50_s24 }
  0x19   :  { %s967_s3 = scalar_lea.vmem %s27_s22, 2048  ;;  %p972_p11 = scmp.lt.s32.totalorder %s27_s22, %s27_s22 }
  0x1a   :  { %p968_p10 = scmp.ne.s32.totalorder %s27_s22, %s967_s3  ;;  %p973_p12 = scmp.lt.s32.totalorder %s967_s3, %s967_s3 }
  0x1c   :  { %p974_p13 = por %p973_p12, %p972_p11 }
  0x1e   :  { %p975_p0 = pnand %p974_p13, %p968_p10 }
  0x20   :  { %978 = shalt.err (!%p975_p0)
}
  0x21   :  { %32 = dma.hbm_to_vmem [thread:$0]  %s1249_s2, 2048, %s27_s22, [#allocation3], %s1027_s14, %s1027_s14, %s1028_s15  }
  0x22   :  { %s987_s5 = scalar_lea.vmem %s51_s24, 2048  ;;  %p992_p2 = scmp.lt.s32.totalorder %s51_s24, %s51_s24 }
  0x23   :  { %p988_p1 = scmp.ne.s32.totalorder %s51_s24, %s987_s5  ;;  %p993_p3 = scmp.lt.s32.totalorder %s987_s5, %s987_s5 }
  0x25   :  { %p994_p4 = por %p993_p3, %p992_p2 }
  0x27   :  { %p995_p5 = pnand %p994_p4, %p988_p1 }
  0x29   :  { %998 = shalt.err (!%p995_p5)
}
  0x2a   :  { %56 = dma.hbm_to_vmem [thread:$0]  %s1251_s4, 2048, %s51_s24, [#allocation5], %s1027_s14, %s1027_s14, %s1028_s15  }
  0x2b   :  { %s1031_s29 = smov [#allocation9]  }
  0x2c   :  { %s76_s30 = sshll.u32 %s1031_s29, 4  ;;  %s77_s30 = int_to_ptr.vmem [resolvable:$true] %s76_s30 }
  0x2d   :  { %s1007_s10 = scalar_lea.vmem %s77_s30, 2048  ;;  %p1012_p7 = scmp.lt.s32.totalorder %s77_s30, %s77_s30 }
  0x2e   :  { %p1008_p6 = scmp.ne.s32.totalorder %s77_s30, %s1007_s10  ;;  %p1013_p8 = scmp.lt.s32.totalorder %s1007_s10, %s1007_s10 }
  0x30   :  { %p1014_p9 = por %p1013_p8, %p1012_p7 }
  0x32   :  { %p1015_p10 = pnand %p1014_p9, %p1008_p6 }
  0x34   :  { %1018 = shalt.err (!%p1015_p10)
}
  0x35   :  { %82 = dma.hbm_to_vmem [thread:$0]  %s1254_s7, 2048, %s77_s30, [#allocation8], %s1027_s14, %s1027_s14, %s1028_s15  }
  0x36   :  { %1019 = dma.done.wait [#allocation3], 2048  }
  0x37   :  { %1020 = vsyncadd [#allocation3], 4294965248 }
  0x38   :  { %1021 = dma.done.wait [#allocation5], 4096  }
  0x39   :  { %1022 = vsyncadd [#allocation5], 4294963200 }
  0x3a   :  { %1023 = dma.done.wait [#allocation8], 4096  }
  0x3b   :  { %1024 = vsyncadd [#allocation8], 4294963200  ;;  %v1032_v0 = vmov 2   ;;  %v1033_v1 = vmov 0   ;;  %v1034_v2 = vmov 0.0   ;;  %v1128_v3 = vld [vmem:[%s1247_s0] sm:$0xff]  ;;  %v101_v43 = vlaneseq }
  0x3c   :  { %910 = vset.pattern.permute.xlu1 %v1032_v0  ;;  %908 = vset.pattern.permute.xlu0 %v1033_v1  ;;  %v190_v4 = vld [vmem:[#allocation4 + $0x78] sm:$0xff]  ;;  %v189_v6 = vld [vmem:[#allocation4 + $0x70] sm:$0xff]  ;;  %v1035_v8 = vmov 3   ;;  %v1036_v9 = vmov 1   ;;  %v188_v10 = vld [vmem:[#allocation4 + $0x68] sm:$0xff]  ;;  %v1037_v14 = vmov 4  }
  0x3d   :  { %716 = vmatprep.subr.mxu0 %v1034_v2  ;;  %751 = vmatprep.subr.mxu1 %v1034_v2  ;;  %v174_v5 = vld [vmem:[#allocation2 + $0x78] sm:$0xff]  ;;  %v173_v7 = vld [vmem:[#allocation2 + $0x70] sm:$0xff]  ;;  %v172_v11 = vld [vmem:[#allocation2 + $0x68] sm:$0xff]  ;;  %v1038_v15 = vmov 5   ;;  %v1039_v19 = vmov 6   ;;  %v1040_v24 = vmov 7  }
  0x3e   :  { %118 = vperm.xlu1 %910, %v1128_v3   ;;  %104 = vperm.xlu0 %908, %v1128_v3   ;;  %v187_v12 = vld [vmem:[#allocation4 + $0x60] sm:$0xff]  ;;  %v186_v16 = vld [vmem:[#allocation4 + $0x58] sm:$0xff]  ;;  %v185_v18 = vld [vmem:[#allocation4 + $0x50] sm:$0xff]  ;;  %vm1041_vm0 = vmmov 0   ;;  %v102_v46 = vand.u32 127, %v101_v43 }
  0x3f   :  { %717 = vmatpush3.msra.mxu0 %v190_v4  ;;  %752 = vmatpush3.msra.mxu1 %v174_v5  ;;  %v171_v13 = vld [vmem:[#allocation2 + $0x60] sm:$0xff]  ;;  %v170_v17 = vld [vmem:[#allocation2 + $0x58] sm:$0xff]  ;;  %v169_v20 = vld [vmem:[#allocation2 + $0x50] sm:$0xff] }
  0x40   :  { %718 = vmatprep.subr.mxu0 %v1034_v2  ;;  %753 = vmatprep.subr.mxu1 %v1034_v2  ;;  %v184_v21 = vld [vmem:[#allocation4 + $0x48] sm:$0xff]  ;;  %v183_v23 = vld [vmem:[#allocation4 + $0x40] sm:$0xff]  ;;  %v182_v26 = vld [vmem:[#allocation4 + $0x38] sm:$0xff] }
  0x41   :  { %719 = vmatpush3.msra.mxu0 %v189_v6  ;;  %754 = vmatpush3.msra.mxu1 %v173_v7  ;;  %v168_v22 = vld [vmem:[#allocation2 + $0x48] sm:$0xff]  ;;  %v167_v25 = vld [vmem:[#allocation2 + $0x40] sm:$0xff]  ;;  %v166_v27 = vld [vmem:[#allocation2 + $0x38] sm:$0xff] }
  0x42   :  { %911 = vset.pattern.permute.xlu1 %v1035_v8  ;;  %909 = vset.pattern.permute.xlu0 %v1036_v9  ;;  %v181_v28 = vld [vmem:[#allocation4 + $0x30] sm:$0xff]  ;;  %v180_v30 = vld [vmem:[#allocation4 + $0x28] sm:$0xff]  ;;  %v179_v32 = vld [vmem:[#allocation4 + $0x20] sm:$0xff] }
  0x43   :  { %125 = vperm.xlu1 %911, %v1128_v3   ;;  %111 = vperm.xlu0 %909, %v1128_v3   ;;  %v165_v29 = vld [vmem:[#allocation2 + $0x30] sm:$0xff]  ;;  %v164_v31 = vld [vmem:[#allocation2 + $0x28] sm:$0xff]  ;;  %v163_v33 = vld [vmem:[#allocation2 + $0x20] sm:$0xff] }
  0x44   :  { %720 = vmatprep.subr.mxu0 %v1034_v2  ;;  %755 = vmatprep.subr.mxu1 %v1034_v2  ;;  %v178_v34 = vld [vmem:[#allocation4 + $0x18] sm:$0xff]  ;;  %v177_v36 = vld [vmem:[#allocation4 + $0x10] sm:$0xff]  ;;  %v176_v38 = vld [vmem:[#allocation4 + $0x8] sm:$0xff] }
  0x45   :  { %721 = vmatpush3.msra.mxu0 %v188_v10  ;;  %756 = vmatpush3.msra.mxu1 %v172_v11  ;;  %v162_v35 = vld [vmem:[#allocation2 + $0x18] sm:$0xff]  ;;  %v161_v37 = vld [vmem:[#allocation2 + $0x10] sm:$0xff]  ;;  %v160_v39 = vld [vmem:[#allocation2 + $0x8] sm:$0xff] }
  0x46   :  { %722 = vmatprep.subr.mxu0 %v1034_v2  ;;  %757 = vmatprep.subr.mxu1 %v1034_v2  ;;  %v175_v40 = vld [vmem:[#allocation4] sm:$0xff]  ;;  %v346_v5 = vld [vmem:[#allocation6 + $0x78] sm:$0xff]  ;;  %v345_v6 = vld [vmem:[#allocation6 + $0x70] sm:$0xff] }
  0x47   :  { %912 = vset.pattern.permute.xlu1 %v1037_v14  ;;  %913 = vset.pattern.permute.xlu0 %v1038_v15  ;;  %v159_v41 = vld [vmem:[#allocation2] sm:$0xff]  ;;  %v344_v7 = vld [vmem:[#allocation6 + $0x68] sm:$0xff]  ;;  %v342_v9 = vld [vmem:[#allocation6 + $0x58] sm:$0xff] }
  0x48   :  { %132 = vperm.xlu1 %912, %v1128_v3   ;;  %139 = vperm.xlu0 %913, %v1128_v3   ;;  %v418_v42 = vld [vmem:[%s1248_s1] sm:$0xff]  ;;  %v341_v10 = vld [vmem:[#allocation6 + $0x50] sm:$0xff]  ;;  %v340_v11 = vld [vmem:[#allocation6 + $0x48] sm:$0xff] }
  0x49   :  { %723 = vmatpush3.msra.mxu0 %v187_v12  ;;  %758 = vmatpush3.msra.mxu1 %v171_v13  ;;  %v343_v8 = vld [vmem:[#allocation6 + $0x60] sm:$0xff]  ;;  %v338_v13 = vld [vmem:[#allocation6 + $0x38] sm:$0xff]  ;;  %v337_v14 = vld [vmem:[#allocation6 + $0x30] sm:$0xff] }
  0x4a   :  { %724 = vmatprep.subr.mxu0 %v1034_v2  ;;  %759 = vmatprep.subr.mxu1 %v1034_v2  ;;  %v339_v12 = vld [vmem:[#allocation6 + $0x40] sm:$0xff]  ;;  %v336_v15 = vld [vmem:[#allocation6 + $0x28] sm:$0xff] }
  0x4b   :  { %725 = vmatpush3.msra.mxu0 %v186_v16  ;;  %760 = vmatpush3.msra.mxu1 %v170_v17  ;;  %v335_v16 = vld [vmem:[#allocation6 + $0x20] sm:$0xff]  ;;  %v334_v17 = vld [vmem:[#allocation6 + $0x18] sm:$0xff]  ;;  %v529_v43 = vld [vmem:[#allocation9 + $0x48] sm:$0xff] }
  0x4c   :  { %914 = vset.pattern.permute.xlu1 %v1039_v19  ;;  %726 = vmatprep.subr.mxu0 %v1034_v2  ;;  %v332_v19 = vld [vmem:[#allocation6 + $0x8] sm:$0xff] }
  0x4d   :  { %146 = vperm.xlu1 %914, %v1128_v3   ;;  %727 = vmatpush3.msra.mxu0 %v185_v18  ;;  %v333_v18 = vld [vmem:[#allocation6 + $0x10] sm:$0xff] }
  0x4e   :  { %761 = vmatprep.subr.mxu1 %v1034_v2  ;;  %728 = vmatprep.subr.mxu0 %v1034_v2 }
  0x4f   :  { %762 = vmatpush3.msra.mxu1 %v169_v20  ;;  %729 = vmatpush3.msra.mxu0 %v184_v21  ;;  %v331_v20 = vld [vmem:[#allocation6] sm:$0xff]  ;;  %v441_v21 = vld [vmem:[#allocation7 + $0x78] sm:$0xff] }
  0x50   :  { %763 = vmatprep.subr.mxu1 %v1034_v2  ;;  %730 = vmatprep.subr.mxu0 %v1034_v2 }
  0x51   :  { %915 = vset.pattern.permute.xlu1 %v1040_v24  ;;  %764 = vmatpush3.msra.mxu1 %v168_v22  ;;  %v440_v22 = vld [vmem:[#allocation7 + $0x70] sm:$0xff]  ;;  %v438_v24 = vld [vmem:[#allocation7 + $0x60] sm:$0xff] }
  0x52   :  { %153 = vperm.xlu1 %915, %v1128_v3   ;;  %731 = vmatpush3.msra.mxu0 %v183_v23  ;;  %v439_v23 = vld [vmem:[#allocation7 + $0x68] sm:$0xff] }
  0x53   :  { %765 = vmatprep.subr.mxu1 %v1034_v2  ;;  %732 = vmatprep.subr.mxu0 %v1034_v2 }
  0x54   :  { %766 = vmatpush3.msra.mxu1 %v167_v25  ;;  %733 = vmatpush3.msra.mxu0 %v182_v26  ;;  %v437_v25 = vld [vmem:[#allocation7 + $0x58] sm:$0xff]  ;;  %v436_v26 = vld [vmem:[#allocation7 + $0x50] sm:$0xff] }
  0x55   :  { %767 = vmatprep.subr.mxu1 %v1034_v2  ;;  %734 = vmatprep.subr.mxu0 %v1034_v2 }
  0x56   :  { %768 = vmatpush3.msra.mxu1 %v166_v27  ;;  %735 = vmatpush3.msra.mxu0 %v181_v28  ;;  %v435_v27 = vld [vmem:[#allocation7 + $0x48] sm:$0xff]  ;;  %v434_v28 = vld [vmem:[#allocation7 + $0x40] sm:$0xff] }
  0x57   :  { %769 = vmatprep.subr.mxu1 %v1034_v2  ;;  %736 = vmatprep.subr.mxu0 %v1034_v2 }
  0x58   :  { %770 = vmatpush3.msra.mxu1 %v165_v29  ;;  %737 = vmatpush3.msra.mxu0 %v180_v30  ;;  %v433_v29 = vld [vmem:[#allocation7 + $0x38] sm:$0xff]  ;;  %v432_v30 = vld [vmem:[#allocation7 + $0x30] sm:$0xff] }
  0x59   :  { %771 = vmatprep.subr.mxu1 %v1034_v2  ;;  %738 = vmatprep.subr.mxu0 %v1034_v2 }
  0x5a   :  { %772 = vmatpush3.msra.mxu1 %v164_v31  ;;  %739 = vmatpush3.msra.mxu0 %v179_v32  ;;  %v431_v31 = vld [vmem:[#allocation7 + $0x28] sm:$0xff]  ;;  %v430_v32 = vld [vmem:[#allocation7 + $0x20] sm:$0xff] }
  0x5b   :  { %773 = vmatprep.subr.mxu1 %v1034_v2  ;;  %740 = vmatprep.subr.mxu0 %v1034_v2 }
  0x5c   :  { %774 = vmatpush3.msra.mxu1 %v163_v33  ;;  %741 = vmatpush3.msra.mxu0 %v178_v34  ;;  %v429_v33 = vld [vmem:[#allocation7 + $0x18] sm:$0xff]  ;;  %v428_v34 = vld [vmem:[#allocation7 + $0x10] sm:$0xff] }
  0x5d   :  { %775 = vmatprep.subr.mxu1 %v1034_v2  ;;  %742 = vmatprep.subr.mxu0 %v1034_v2 }
  0x5e   :  { %776 = vmatpush3.msra.mxu1 %v162_v35  ;;  %743 = vmatpush3.msra.mxu0 %v177_v36  ;;  %v427_v35 = vld [vmem:[#allocation7 + $0x8] sm:$0xff]  ;;  %v426_v36 = vld [vmem:[#allocation7] sm:$0xff] }
  0x5f   :  { %777 = vmatprep.subr.mxu1 %v1034_v2  ;;  %744 = vmatprep.subr.mxu0 %v1034_v2 }
  0x60   :  { %778 = vmatpush3.msra.mxu1 %v161_v37  ;;  %745 = vmatpush3.msra.mxu0 %v176_v38  ;;  %v535_v37 = vld [vmem:[#allocation9 + $0x78] sm:$0xff]  ;;  %v534_v38 = vld [vmem:[#allocation9 + $0x70] sm:$0xff] }
  0x61   :  { %779 = vmatprep.subr.mxu1 %v1034_v2  ;;  %746 = vmatprep.subr.mxu0 %v1034_v2 }
  0x62   :  { %780 = vmatpush3.msra.mxu1 %v160_v39  ;;  %747 = vmatpush3.msra.mxu0 %v175_v40  ;;  %v533_v39 = vld [vmem:[#allocation9 + $0x68] sm:$0xff]  ;;  %v532_v40 = vld [vmem:[#allocation9 + $0x60] sm:$0xff] }
  0x63   :  { %781 = vmatprep.subr.mxu1 %v1034_v2  ;;  %748 = vmatprep.mubr.msk.f32.mxu0 %vm1041_vm0, %v1034_v2 }
  0x64   :  { %782 = vmatpush3.msra.mxu1 %v159_v41  ;;  %783 = vmatprep.mubr.msk.f32.mxu1 %vm1041_vm0, %v1034_v2  ;;  %v531_v41 = vld [vmem:[#allocation9 + $0x58] sm:$0xff] }
  0x65   :  { %786 = vmatprep.subr.mxu0 %v1034_v2  ;;  %916 = vset.pattern.permute.xlu0 %v1033_v1 }
  0x66   :  { %821 = vmatprep.subr.mxu1 %v1034_v2  ;;  %421 = vperm.xlu0 %916, %v418_v42   ;;  %v530_v42 = vld [vmem:[#allocation9 + $0x50] sm:$0xff] }
  0xb9   :  { %v119_v44 = vpop.permute.xlu1 %118  ;;  %v105_v45 = vpop.permute.xlu0 %104 }
  0xba   :  { %vm106_vm1 = vcmp.eq.s32.totalorder %v105_v45, %v102_v46  ;;  %vm120_vm2 = vcmp.eq.s32.totalorder %v119_v44, %v102_v46  ;;  %v528_v44 = vld [vmem:[#allocation9 + $0x40] sm:$0xff]  ;;  %v527_v45 = vld [vmem:[#allocation9 + $0x38] sm:$0xff] }
  0xbb   :  { %v621_v49 = vsel %vm106_vm1, 1.0, %v1034_v2  ;;  %v623_v52 = vsel %vm120_vm2, 1.0, %v1034_v2 }
  0xbe   :  { %v126_v47 = vpop.permute.xlu1 %125  ;;  %v112_v48 = vpop.permute.xlu0 %111 }
  0xbf   :  { %vm113_vm3 = vcmp.eq.s32.totalorder %v112_v48, %v102_v46  ;;  %vm127_vm4 = vcmp.eq.s32.totalorder %v126_v47, %v102_v46  ;;  %v525_v47 = vld [vmem:[#allocation9 + $0x28] sm:$0xff]  ;;  %v524_v48 = vld [vmem:[#allocation9 + $0x20] sm:$0xff] }
  0xc0   :  { %v622_v50 = vsel %vm113_vm3, 1.0, %v1034_v2  ;;  %v624_v56 = vsel %vm127_vm4, 1.0, %v1034_v2 }
  0xc1   :  { %v116_v51 = vadd.f32 %v622_v50, %v621_v49  ;;  %v523_v49 = vld [vmem:[#allocation9 + $0x18] sm:$0xff] }
  0xc3   :  { %v123_v53 = vadd.f32 %v623_v52, %v116_v51  ;;  %v133_v54 = vpop.permute.xlu1 %132  ;;  %v140_v55 = vpop.permute.xlu0 %139 }
  0xc4   :  { %vm134_vm5 = vcmp.eq.s32.totalorder %v133_v54, %v102_v46  ;;  %vm141_vm6 = vcmp.eq.s32.totalorder %v140_v55, %v102_v46 }
  0xc5   :  { %v130_v57 = vadd.f32 %v624_v56, %v123_v53  ;;  %v625_v58 = vsel %vm134_vm5, 1.0, %v1034_v2  ;;  %v626_v60 = vsel %vm141_vm6, 1.0, %v1034_v2 }
  0xc7   :  { %v137_v59 = vadd.f32 %v625_v58, %v130_v57 }
  0xc8   :  { %v147_v61 = vpop.permute.xlu1 %146 }
  0xc9   :  { %vm148_vm7 = vcmp.eq.s32.totalorder %v147_v61, %v102_v46  ;;  %v144_v62 = vadd.f32 %v626_v60, %v137_v59  ;;  %v522_v61 = vld [vmem:[#allocation9 + $0x10] sm:$0xff] }
  0xca   :  { %v627_v63 = vsel %vm148_vm7, 1.0, %v1034_v2 }
  0xcb   :  { %v151_v1 = vadd.f32 %v627_v63, %v144_v62  ;;  %v521_v62 = vld [vmem:[#allocation9 + $0x8] sm:$0xff]  ;;  %v520_v63 = vld [vmem:[#allocation9] sm:$0xff] }
  0xcd   :  { %v154_v0 = vpop.permute.xlu1 %153 }
  0xce   :  { %vm155_vm8 = vcmp.eq.s32.totalorder %v154_v0, %v102_v46  ;;  %v526_v46 = vld [vmem:[#allocation9 + $0x30] sm:$0xff]  ;;  %v629_v0 = vld [vmem:[%s1253_s6] ss:$0 sm:$0xff] }
  0xcf   :  { %v628_v3 = vsel %vm155_vm8, 1.0, %v1034_v2 }
  0xd0   :  { %v158_v4 = vadd.f32 %v628_v3, %v151_v1 }
  0xd2   :  { %749 = vmatmul.mubr.f32.vlgmr.msra.gmra.mxu0 %v158_v4  ;;  %784 = vmatmul.mubr.f32.vlgmr.msra.gmra.mxu1 %v158_v4 }
  0xd3   :  { %787 = vmatpush3.msra.mxu0 %v346_v5  ;;  %818 = vmatprep.mubr.msk.f32.mxu0 %vm1041_vm0, %v1034_v2 }
  0xd4   :  { %788 = vmatprep.subr.mxu0 %v1034_v2  ;;  %853 = vmatprep.mubr.msk.f32.mxu1 %vm1041_vm0, %v1034_v2 }
  0xd5   :  { %789 = vmatpush3.msra.mxu0 %v345_v6  ;;  %822 = vmatpush3.msra.mxu1 %v441_v21  ;;  %v630_v6 = vld [vmem:[%s1255_s8] ss:$0 sm:$0xff] }
  0xd6   :  { %790 = vmatprep.subr.mxu0 %v1034_v2  ;;  %823 = vmatprep.subr.mxu1 %v1034_v2 }
  0xd7   :  { %791 = vmatpush3.msra.mxu0 %v344_v7  ;;  %824 = vmatpush3.msra.mxu1 %v440_v22 }
  0xd8   :  { %792 = vmatprep.subr.mxu0 %v1034_v2  ;;  %825 = vmatprep.subr.mxu1 %v1034_v2 }
  0xd9   :  { %793 = vmatpush3.msra.mxu0 %v343_v8  ;;  %826 = vmatpush3.msra.mxu1 %v439_v23 }
  0xda   :  { %794 = vmatprep.subr.mxu0 %v1034_v2  ;;  %827 = vmatprep.subr.mxu1 %v1034_v2 }
  0xdb   :  { %795 = vmatpush3.msra.mxu0 %v342_v9  ;;  %828 = vmatpush3.msra.mxu1 %v438_v24 }
  0xdc   :  { %796 = vmatprep.subr.mxu0 %v1034_v2  ;;  %829 = vmatprep.subr.mxu1 %v1034_v2 }
  0xdd   :  { %797 = vmatpush3.msra.mxu0 %v341_v10  ;;  %830 = vmatpush3.msra.mxu1 %v437_v25 }
  0xde   :  { %798 = vmatprep.subr.mxu0 %v1034_v2  ;;  %831 = vmatprep.subr.mxu1 %v1034_v2 }
  0xdf   :  { %799 = vmatpush3.msra.mxu0 %v340_v11  ;;  %832 = vmatpush3.msra.mxu1 %v436_v26 }
  0xe0   :  { %800 = vmatprep.subr.mxu0 %v1034_v2  ;;  %833 = vmatprep.subr.mxu1 %v1034_v2 }
  0xe1   :  { %801 = vmatpush3.msra.mxu0 %v339_v12  ;;  %834 = vmatpush3.msra.mxu1 %v435_v27  ;;  %v422_v54 = vpop.permute.xlu0 %421 }
  0xe2   :  { %802 = vmatprep.subr.mxu0 %v1034_v2  ;;  %835 = vmatprep.subr.mxu1 %v1034_v2  ;;  %917 = vrcp.f32 %v422_v54 }
  0xe3   :  { %803 = vmatpush3.msra.mxu0 %v338_v13  ;;  %836 = vmatpush3.msra.mxu1 %v434_v28 }
  0xe4   :  { %804 = vmatprep.subr.mxu0 %v1034_v2  ;;  %837 = vmatprep.subr.mxu1 %v1034_v2 }
  0xe5   :  { %805 = vmatpush3.msra.mxu0 %v337_v14  ;;  %838 = vmatpush3.msra.mxu1 %v433_v29 }
  0xe6   :  { %806 = vmatprep.subr.mxu0 %v1034_v2  ;;  %839 = vmatprep.subr.mxu1 %v1034_v2 }
  0xe7   :  { %807 = vmatpush3.msra.mxu0 %v336_v15  ;;  %840 = vmatpush3.msra.mxu1 %v432_v30 }
  0xe8   :  { %808 = vmatprep.subr.mxu0 %v1034_v2  ;;  %841 = vmatprep.subr.mxu1 %v1034_v2 }
  0xe9   :  { %809 = vmatpush3.msra.mxu0 %v335_v16  ;;  %842 = vmatpush3.msra.mxu1 %v431_v31 }
  0xea   :  { %810 = vmatprep.subr.mxu0 %v1034_v2  ;;  %843 = vmatprep.subr.mxu1 %v1034_v2 }
  0xeb   :  { %811 = vmatpush3.msra.mxu0 %v334_v17  ;;  %844 = vmatpush3.msra.mxu1 %v430_v32 }
  0xec   :  { %812 = vmatprep.subr.mxu0 %v1034_v2  ;;  %845 = vmatprep.subr.mxu1 %v1034_v2 }
  0xed   :  { %813 = vmatpush3.msra.mxu0 %v333_v18  ;;  %846 = vmatpush3.msra.mxu1 %v429_v33 }
  0xee   :  { %814 = vmatprep.subr.mxu0 %v1034_v2  ;;  %847 = vmatprep.subr.mxu1 %v1034_v2 }
  0xef   :  { %815 = vmatpush3.msra.mxu0 %v332_v19  ;;  %848 = vmatpush3.msra.mxu1 %v428_v34  ;;  %v918_v56 = vpop.eup %917 }
  0xf0   :  { %816 = vmatprep.subr.mxu0 %v1034_v2  ;;  %849 = vmatprep.subr.mxu1 %v1034_v2 }
  0xf1   :  { %817 = vmatpush3.msra.mxu0 %v331_v20  ;;  %850 = vmatpush3.msra.mxu1 %v427_v35 }
  0xf2   :  { %819 = vmatmul.mubr.f32.vlgmr.msra.gmra.mxu0 %v158_v4  ;;  %856 = vmatprep.subr.mxu0 %v1034_v2 }
  0xf3   :  { %888 = vmatprep.mubr.msk.f32.mxu0 %vm1041_vm0, %v1034_v2  ;;  %851 = vmatprep.subr.mxu1 %v1034_v2 }
  0xf4   :  { %852 = vmatpush3.msra.mxu1 %v426_v36  ;;  %857 = vmatpush3.msra.mxu0 %v535_v37 }
  0xf5   :  { %858 = vmatprep.subr.mxu0 %v1034_v2 }
  0xf6   :  { %859 = vmatpush3.msra.mxu0 %v534_v38 }
  0xf7   :  { %860 = vmatprep.subr.mxu0 %v1034_v2 }
  0xf8   :  { %861 = vmatpush3.msra.mxu0 %v533_v39 }
  0xf9   :  { %862 = vmatprep.subr.mxu0 %v1034_v2 }
  0xfa   :  { %863 = vmatpush3.msra.mxu0 %v532_v40 }
  0xfb   :  { %864 = vmatprep.subr.mxu0 %v1034_v2 }
  0xfc   :  { %865 = vmatpush3.msra.mxu0 %v531_v41 }
  0xfd   :  { %866 = vmatprep.subr.mxu0 %v1034_v2 }
  0xfe   :  { %867 = vmatpush3.msra.mxu0 %v530_v42 }
  0xff   :  { %868 = vmatprep.subr.mxu0 %v1034_v2 }
 0x100   :  { %869 = vmatpush3.msra.mxu0 %v529_v43 }
 0x101   :  { %870 = vmatprep.subr.mxu0 %v1034_v2 }
 0x102   :  { %871 = vmatpush3.msra.mxu0 %v528_v44 }
 0x103   :  { %872 = vmatprep.subr.mxu0 %v1034_v2 }
 0x104   :  { %873 = vmatpush3.msra.mxu0 %v527_v45 }
 0x105   :  { %874 = vmatprep.subr.mxu0 %v1034_v2 }
 0x106   :  { %875 = vmatpush3.msra.mxu0 %v526_v46 }
 0x107   :  { %876 = vmatprep.subr.mxu0 %v1034_v2 }
 0x108   :  { %877 = vmatpush3.msra.mxu0 %v525_v47 }
 0x109   :  { %878 = vmatprep.subr.mxu0 %v1034_v2 }
 0x10a   :  { %879 = vmatpush3.msra.mxu0 %v524_v48 }
 0x10b   :  { %880 = vmatprep.subr.mxu0 %v1034_v2 }
 0x10c   :  { %881 = vmatpush3.msra.mxu0 %v523_v49 }
 0x10d   :  { %882 = vmatprep.subr.mxu0 %v1034_v2 }
 0x10e   :  { %883 = vmatpush3.msra.mxu0 %v522_v61 }
 0x10f   :  { %884 = vmatprep.subr.mxu0 %v1034_v2 }
 0x110   :  { %885 = vmatpush3.msra.mxu0 %v521_v62 }
 0x111   :  { %886 = vmatprep.subr.mxu0 %v1034_v2 }
 0x112   :  { %887 = vmatpush3.msra.mxu0 %v520_v63 }
 0x192   :  { %v257_v50 = vpop.f32.mrf.mxu0  ;;  %v327_v51 = vpop.f32.mrf.mxu1 }
 0x193   :  { %v328_v55 = vadd.f32 %v327_v51, %v257_v50 }
 0x194   :  { %v750_v52 = vpop.f32.mrf.mxu0  ;;  %v785_v53 = vpop.f32.mrf.mxu1 }
 0x1b2   :  { %v413_v57 = vpop.f32.mrf.mxu0 }
 0x1b3   :  { %v417_v58 = vadd.f32 %v413_v57, %v328_v55 }
 0x1b4   :  { %v820_v59 = vpop.f32.mrf.mxu0 }
 0x1b5   :  { %v425_v60 = vmul.f32 %v918_v56, %v417_v58 }
 0x1b7   :  { %854 = vmatmul.mubr.f32.vlgmr.msra.gmra.mxu1 %v425_v60 }
 0x277   :  { %v515_v1 = vpop.f32.mrf.mxu1 }
 0x278   :  { %v516_v3 = vadd.f32 %v629_v0, %v515_v1 }
 0x279   :  { %v855_v4 = vpop.f32.mrf.mxu1 }
 0x27a   :  { %v519_v5 = vmax.f32 %v516_v3, 0.0 }
 0x27c   :  { %889 = vmatmul.mubr.f32.vlgmr.msra.gmra.mxu0 %v519_v5 }
 0x33c   :  { %v609_v7 = vpop.f32.mrf.mxu0 }
 0x33d   :  { %v610_v8 = vadd.f32 %v630_v6, %v609_v7 }
 0x33e   :  { %v890_v9 = vpop.f32.mrf.mxu0 }
 0x33f   :  { %613 = vst [vmem:[%s1256_s9] sm:$0xff] %v610_v8 }
 0x340   :  { %618 = vsyncpa [#allocation3], 1 }
 0x341   :  { %619 = vsyncpa [#allocation5], 1 }
 0x342   :  { %620 = vsyncpa [#allocation8], 1 }

</bundles_post_ra>
